<compile_context>
chip_gen: v6e
topology: v6e:2x2x1
jax: 0.10.0
libtpu: 0.0.40
codegen_flags: <defaults>
</compile_context>

<pallas_src>
import functools

import jax
import jax.numpy as jnp
import numpy as np
from jax.experimental import pallas as pl
from jax.experimental.pallas import tpu as pltpu

EPS = 1e-5                      # nn.BatchNorm2d default
LANES = 128
VMEM_LIMIT = 32 * 1024 * 1024   # explicit scoped-VMEM budget (fits every gen)
CONV_TILE_BUDGET = 8 * 1024 * 1024   # per-call working-set target for the conv
BN_TILE_BUDGET = 4 * 1024 * 1024     # per-call working-set target for BN stats


def _round_up(x, m):
    return (x + m - 1) // m * m


def _largest_divisor(n, cap, multiple=1):
    """Largest d <= cap with d % multiple == 0 and n % d == 0 (fallback: n)."""
    best = None
    d = multiple
    while d <= min(n, cap):
        if n % d == 0:
            best = d
        d += multiple
    return best if best is not None else n


def _bn_row_tile(m, c):
    """Row tile for the (M, C) stats pass sized against a VMEM budget."""
    cap = max(16, (BN_TILE_BUDGET // (c * 4 * 2)) // 16 * 16)   # 2 buffers, f32
    return _largest_divisor(m, min(m, cap), multiple=16)        # bf16-safe sublanes


def _conv_row_tile(h, wdim, cin, cout, conv_dtype, has_skip, max_rows=None):
    """Largest H-row tile dividing h whose conv working set fits the budget."""
    item = jnp.dtype(conv_dtype).itemsize
    cap = h if max_rows is None else min(h, max_rows)
    best = 1
    for th in range(1, cap + 1):
        if h % th:
            continue
        used = 0
        used += 2 * th * wdim * cin * 4          # x_cur blocks (f32 worst case), 2 bufs
        used += 4 * wdim * cin * 4               # halo rows, 2 specs x 2 bufs
        used += 2 * th * wdim * cout * 4         # out blocks
        if has_skip:
            used += 2 * th * wdim * cout * 4     # skip blocks (f32)
        used += (th + 2) * (wdim + 2) * cin * item       # padded slab scratch
        used += 2 * 3 * 3 * cin * cout * item            # packed weights (2 bufs)
        used += th * (wdim + 2) * 3 * cin * item         # kcat intermediate
        used += 2 * th * (wdim + 2) * cout * 4           # matmul result + f32 acc
        if used <= CONV_TILE_BUDGET:
            best = th
    return best


# ---------------------------------------------------------------------------
# Phase 1: per-channel BatchNorm statistics -> (scale, shift)
# ---------------------------------------------------------------------------
def bn_stats_kernel(x_ref, gamma_ref, beta_ref, scale_ref, shift_ref,
                    sum_ref, sq_ref, *, inv_m):
    i = pl.program_id(0)

    @pl.when(i == 0)
    def _init():
        sum_ref[...] = jnp.zeros_like(sum_ref)
        sq_ref[...] = jnp.zeros_like(sq_ref)

    x = x_ref[...].astype(jnp.float32)                      # (TM, C)
    # single traversal of the tile: sum and sum-of-squares together
    sum_ref[...] += jnp.sum(x, axis=0, keepdims=True)
    sq_ref[...] += jnp.sum(x * x, axis=0, keepdims=True)

    @pl.when(i == pl.num_programs(0) - 1)
    def _finalize():
        mean = sum_ref[...] * inv_m
        var = sq_ref[...] * inv_m - mean * mean
        scale = gamma_ref[...] * jax.lax.rsqrt(var + EPS)
        scale_ref[...] = scale
        shift_ref[...] = beta_ref[...] - mean * scale


def bn_scale_shift(x_flat, gamma, beta):
    """x_flat: (M, C) with C % 128 == 0.  Returns f32 (1, C) scale and shift."""
    m, c = x_flat.shape
    tm = _bn_row_tile(m, c)
    kernel = functools.partial(bn_stats_kernel, inv_m=1.0 / m)
    return pl.pallas_call(
        kernel,
        out_shape=(jax.ShapeDtypeStruct((1, c), jnp.float32),
                   jax.ShapeDtypeStruct((1, c), jnp.float32)),
        grid=(m // tm,),
        in_specs=[pl.BlockSpec((tm, c), lambda i: (i, 0)),
                  pl.BlockSpec((1, c), lambda i: (0, 0)),
                  pl.BlockSpec((1, c), lambda i: (0, 0))],
        out_specs=(pl.BlockSpec((1, c), lambda i: (0, 0)),
                   pl.BlockSpec((1, c), lambda i: (0, 0))),
        scratch_shapes=[pltpu.VMEM((1, c), jnp.float32),
                        pltpu.VMEM((1, c), jnp.float32)],
        compiler_params=pltpu.CompilerParams(
            dimension_semantics=("arbitrary",),             # reduction axis
            vmem_limit_bytes=VMEM_LIMIT),
    )(x_flat, gamma.reshape(1, c), beta.reshape(1, c))


# ---------------------------------------------------------------------------
# Phase 2: fused BN-affine + ReLU + 3x3 conv (+bias) (+skip), tiled over (N, H)
# ---------------------------------------------------------------------------
def bn_relu_conv_kernel(*refs, th, width, has_bias, has_skip, conv_dtype):
    (x_top_ref, x_cur_ref, x_bot_ref, scale_ref, shift_ref, w_ref) = refs[:6]
    idx = 6
    bias_ref = skip_ref = None
    if has_bias:
        bias_ref = refs[idx]; idx += 1
    if has_skip:
        skip_ref = refs[idx]; idx += 1
    out_ref = refs[idx]
    ybuf = refs[idx + 1]          # VMEM scratch: (th+2, width+2, Cin_p) conv_dtype

    hi = pl.program_id(1)
    n_h = pl.num_programs(1)

    cin = scale_ref.shape[-1]
    cout = out_ref.shape[-1]

    scale = scale_ref[...].reshape(1, 1, cin)               # f32
    shift = shift_ref[...].reshape(1, 1, cin)

    def norm_relu(v):                                       # BN affine + ReLU in f32
        return jnp.maximum(v.astype(jnp.float32) * scale + shift, 0.0)

    y_cur = norm_relu(x_cur_ref[0])                         # (th, width, cin)
    # Halo rows: at the image border the index_map clamped onto a duplicate
    # in-image row, so the conv zero-padding row is forced to zero here.
    y_top = jnp.where(hi > 0, norm_relu(x_top_ref[0]), 0.0)         # (1, width, cin)
    y_bot = jnp.where(hi < n_h - 1, norm_relu(x_bot_ref[0]), 0.0)

    # Zero-padded (padding=1 along W) activation slab in conv_dtype.  Every
    # element of ybuf is rewritten each grid step, so "parallel" semantics are
    # safe (no cross-iteration carry).
    ybuf[:, 0:1, :] = jnp.zeros((th + 2, 1, cin), conv_dtype)
    ybuf[:, width + 1:width + 2, :] = jnp.zeros((th + 2, 1, cin), conv_dtype)
    ybuf[0:1, 1:width + 1, :] = y_top.astype(conv_dtype)
    ybuf[1:th + 1, 1:width + 1, :] = y_cur.astype(conv_dtype)
    ybuf[th + 1:th + 2, 1:width + 1, :] = y_bot.astype(conv_dtype)

    # Fold the 3 kh taps into the contraction dim using contiguous row slices
    # only: kcat[h, u] = [y[h+0,u], y[h+1,u], y[h+2,u]]  -> K = 3*cin.
    kcat = jnp.concatenate(
        [ybuf[0:th], ybuf[1:th + 1], ybuf[2:th + 2]], axis=-1)
    kcat = kcat.reshape(th * (width + 2), 3 * cin)

    acc = jnp.zeros((th, width, cout), jnp.float32)
    for kw in range(3):           # kw taps -> shifted adds of the MXU result
        r = jnp.dot(kcat, w_ref[kw], preferred_element_type=jnp.float32)
        r = r.reshape(th, width + 2, cout)
        acc = acc + r[:, kw:kw + width, :]

    if has_bias:
        acc = acc + bias_ref[...].reshape(1, 1, cout)
    if has_skip:
        acc = acc + skip_ref[0].astype(jnp.float32)
    out_ref[0] = acc.astype(out_ref.dtype)


def bn_relu_conv(x, scale, shift, w_packed, bias=None, skip=None, *,
                 out_dtype, conv_dtype, max_rows=None):
    """x: (N,H,W,Cin_p) NHWC with Cin_p % 128 == 0; w_packed: (3, 3*Cin_p, Cout_p)."""
    n, h, wdim, cin = x.shape
    cout = w_packed.shape[-1]
    has_bias = bias is not None
    has_skip = skip is not None
    th = _conv_row_tile(h, wdim, cin, cout, conv_dtype, has_skip, max_rows)
    n_h = h // th

    kernel = functools.partial(
        bn_relu_conv_kernel, th=th, width=wdim,
        has_bias=has_bias, has_skip=has_skip, conv_dtype=conv_dtype)

    def cur_map(i, j):
        return (i, j, 0, 0)

    def top_map(i, j):            # H block size 1 => block index == row index
        return (i, jnp.maximum(j * th - 1, 0), 0, 0)

    def bot_map(i, j):
        return (i, jnp.minimum(j * th + th, h - 1), 0, 0)

    inputs = [x, x, x, scale, shift, w_packed]
    in_specs = [
        pl.BlockSpec((1, 1, wdim, cin), top_map),
        pl.BlockSpec((1, th, wdim, cin), cur_map),
        pl.BlockSpec((1, 1, wdim, cin), bot_map),
        pl.BlockSpec((1, cin), lambda i, j: (0, 0)),
        pl.BlockSpec((1, cin), lambda i, j: (0, 0)),
        pl.BlockSpec((3, 3 * cin, cout), lambda i, j: (0, 0, 0)),
    ]
    if has_bias:
        inputs.append(bias.reshape(1, cout))
        in_specs.append(pl.BlockSpec((1, cout), lambda i, j: (0, 0)))
    if has_skip:
        inputs.append(skip)
        in_specs.append(pl.BlockSpec((1, th, wdim, cout), cur_map))

    return pl.pallas_call(
        kernel,
        out_shape=jax.ShapeDtypeStruct((n, h, wdim, cout), out_dtype),
        grid=(n, n_h),
        in_specs=in_specs,
        out_specs=pl.BlockSpec((1, th, wdim, cout), cur_map),
        scratch_shapes=[pltpu.VMEM((th + 2, wdim + 2, cin), conv_dtype)],
        compiler_params=pltpu.CompilerParams(
            dimension_semantics=("parallel", "parallel"),   # megacore
            vmem_limit_bytes=VMEM_LIMIT),
    )(*inputs)


# ---------------------------------------------------------------------------
# Parameter preparation (weight norm, lane padding, kh-folded weight packing)
# ---------------------------------------------------------------------------
def wn_weight(v, g):
    """PyTorch weight_norm (dim=0) for Conv2d: v (Cout,Cin,KH,KW), g (Cout,)."""
    norm = jnp.sqrt(jnp.sum(v * v, axis=(1, 2, 3)))
    w = v * (g / norm)[:, None, None, None]
    return jnp.transpose(w, (2, 3, 1, 0))                   # (KH, KW, Cin, Cout)


def _pack_weight(w_hwio, cin_p, cout_p, conv_dtype):
    """(3,3,Cin,Cout) -> (KW, KH*Cin_p, Cout_p): kh folded into the K dim."""
    kh, kw, cin, cout = w_hwio.shape
    w_pad = jnp.zeros((kh, kw, cin_p, cout_p), jnp.float32)
    w_pad = w_pad.at[:, :, :cin, :cout].set(w_hwio)
    w_pack = jnp.transpose(w_pad, (1, 0, 2, 3)).reshape(kw, kh * cin_p, cout_p)
    return w_pack.astype(conv_dtype)


def _pad_channels(a, c_p):
    pad = c_p - a.shape[-1]
    if pad == 0:
        return a
    cfg = [(0, 0)] * (a.ndim - 1) + [(0, pad)]
    return jnp.pad(a, cfg)


def residual_block(x_nchw, params, conv_dtype=jnp.bfloat16, max_rows=None):
    """Pallas forward pass.  x_nchw: (N, C, H, W), matches the PyTorch module."""
    x = jnp.transpose(x_nchw, (0, 2, 3, 1)).astype(jnp.float32)     # NHWC
    n, h, wdim, cin = x.shape
    cout = params["v1"].shape[0]
    cin_p = _round_up(cin, LANES)
    cout_p = _round_up(cout, LANES)

    xp = _pad_channels(x, cin_p)                                    # f32, lane-dense
    gamma1 = _pad_channels(params["gamma1"], cin_p)                 # pads are 0 =>
    beta1 = _pad_channels(params["beta1"], cin_p)                   # scale/shift = 0
    gamma2 = _pad_channels(params["gamma2"], cout_p)
    beta2 = _pad_channels(params["beta2"], cout_p)
    bias2 = _pad_channels(params["b2"], cout_p)
    w1 = _pack_weight(wn_weight(params["v1"], params["g1"]), cin_p, cout_p, conv_dtype)
    w2 = _pack_weight(wn_weight(params["v2"], params["g2"]), cout_p, cout_p, conv_dtype)

    # layer 1: BN stats -> fused affine + ReLU + conv (no bias)
    s1, t1 = bn_scale_shift(xp.reshape(n * h * wdim, cin_p), gamma1, beta1)
    hmid = bn_relu_conv(xp, s1, t1, w1, out_dtype=conv_dtype,
                        conv_dtype=conv_dtype, max_rows=max_rows)

    # layer 2: BN stats -> fused affine + ReLU + conv + bias + residual
    s2, t2 = bn_scale_shift(hmid.reshape(n * h * wdim, cout_p), gamma2, beta2)
    outp = bn_relu_conv(hmid, s2, t2, w2, bias=bias2, skip=xp,
                        out_dtype=jnp.float32, conv_dtype=conv_dtype,
                        max_rows=max_rows)

    out = outp[..., :cout]
    return jnp.transpose(out, (0, 3, 1, 2)).astype(x_nchw.dtype)    # back to NCHW


# ---------------------------------------------------------------------------
# Pure-JAX reference (lax.conv) for correctness checking
# ---------------------------------------------------------------------------
def residual_block_reference(x_nchw, params):
    x = jnp.transpose(x_nchw, (0, 2, 3, 1))

    def bn_relu(h, gamma, beta):
        mean = jnp.mean(h, axis=(0, 1, 2))
        var = jnp.mean(h * h, axis=(0, 1, 2)) - mean * mean
        return jnp.maximum((h - mean) * gamma * jax.lax.rsqrt(var + EPS) + beta, 0.0)

    def conv(h, w_hwio, bias=None):
        out = jax.lax.conv_general_dilated(
            h, w_hwio, window_strides=(1, 1), padding="SAME",
            dimension_numbers=("NHWC", "HWIO", "NHWC"))
        if bias is not None:
            out = out + bias
        return out

    w1 = wn_weight(params["v1"], params["g1"])
    w2 = wn_weight(params["v2"], params["g2"])
    h = conv(bn_relu(x, params["gamma1"], params["beta1"]), w1)
    h = conv(bn_relu(h, params["gamma2"], params["beta2"]), w2, params["b2"])
    return jnp.transpose(h + x, (0, 3, 1, 2))


def init_params(key, in_channels, out_channels):
    ks = jax.random.split(key, 8)
    return {
        "gamma1": 1.0 + 0.1 * jax.random.normal(ks[0], (in_channels,), jnp.float32),
        "beta1": 0.1 * jax.random.normal(ks[1], (in_channels,), jnp.float32),
        "gamma2": 1.0 + 0.1 * jax.random.normal(ks[2], (out_channels,), jnp.float32),
        "beta2": 0.1 * jax.random.normal(ks[3], (out_channels,), jnp.float32),
        "v1": jax.random.normal(ks[4], (out_channels, in_channels, 3, 3), jnp.float32) * 0.2,
        "g1": 1.0 + 0.1 * jax.random.normal(ks[5], (out_channels,), jnp.float32),
        "v2": jax.random.normal(ks[6], (out_channels, out_channels, 3, 3), jnp.float32) * 0.2,
        "g2": 1.0 + 0.1 * jax.random.normal(ks[7], (out_channels,), jnp.float32),
        "b2": 0.05 * jnp.arange(out_channels, dtype=jnp.float32),
    }


if __name__ == "__main__":
    N, C, Hdim, Wdim = 2, 4, 16, 16   # residual add requires in_channels == out_channels
    key = jax.random.PRNGKey(0)
    kx, kp = jax.random.split(key)
    x = jax.random.normal(kx, (N, C, Hdim, Wdim), jnp.float32)
    params = init_params(kp, C, C)

    ref = jax.block_until_ready(residual_block_reference(x, params))

    # f32 MXU-operand path, auto (single-tile) H tiling: tight check vs f32 ref.
    out_f32 = jax.block_until_ready(residual_block(x, params, conv_dtype=jnp.float32))
    assert out_f32.shape == (N, C, Hdim, Wdim)
    np.testing.assert_allclose(np.asarray(out_f32), np.asarray(ref), rtol=1e-3, atol=1e-3)

    # f32 path, forced small H tiles: exercises the multi-tile halo path.
    out_f32_t = jax.block_until_ready(
        residual_block(x, params, conv_dtype=jnp.float32, max_rows=4))
    np.testing.assert_allclose(np.asarray(out_f32_t), np.asarray(ref), rtol=1e-3, atol=1e-3)

    # Default path: bf16 MXU operands + bf16 intermediate, f32 accumulation.
    out_bf16 = jax.block_until_ready(residual_block(x, params))
    assert out_bf16.shape == (N, C, Hdim, Wdim)
    np.testing.assert_allclose(np.asarray(out_bf16), np.asarray(ref), rtol=2e-2, atol=2e-2)

    print("KERNEL_OK")
</pallas_src>

<mosaic_0001>
module attributes {stable_mosaic.version = 11 : i64} {
  func.func @bn_stats_kernel(%arg0: i32, %arg1: memref<512x128xf32, #tpu.memory_space<vmem>>, %arg2: memref<1x128xf32, #tpu.memory_space<vmem>>, %arg3: memref<1x128xf32, #tpu.memory_space<vmem>>, %arg4: memref<1x128xf32, #tpu.memory_space<vmem>>, %arg5: memref<1x128xf32, #tpu.memory_space<vmem>>, %arg6: memref<1x128xf32, #tpu.memory_space<vmem>>, %arg7: memref<1x128xf32, #tpu.memory_space<vmem>>) attributes {dimension_semantics = [#tpu.dimension_semantics<arbitrary>], iteration_bounds = array<i64: 1>, scalar_prefetch = 0 : i64, scratch_operands = 2 : i64, tpu.core_type = #tpu.core_type<tc>, window_params = [{transform_indices = @transform_0, window_bounds = array<i64: 512, 128>}, {pipeline_mode = #tpu.pipeline_mode<synchronous>, transform_indices = @transform_1, window_bounds = array<i64: 1, 128>}, {pipeline_mode = #tpu.pipeline_mode<synchronous>, transform_indices = @transform_2, window_bounds = array<i64: 1, 128>}, {pipeline_mode = #tpu.pipeline_mode<synchronous>, transform_indices = @transform_3, window_bounds = array<i64: 1, 128>}, {pipeline_mode = #tpu.pipeline_mode<synchronous>, transform_indices = @transform_4, window_bounds = array<i64: 1, 128>}]} {
    %c0_i32 = arith.constant 0 : i32
    %0 = arith.cmpi eq, %arg0, %c0_i32 : i32
    %1 = arith.extui %0 : i1 to i32
    %c0_i32_0 = arith.constant 0 : i32
    %2 = arith.cmpi ne, %1, %c0_i32_0 : i32
    scf.if %2 {
      %cst_13 = arith.constant 0.000000e+00 : f32
      %18 = vector.broadcast %cst_13 : f32 to vector<1x128xf32>
      %c0_14 = arith.constant 0 : index
      %c0_15 = arith.constant 0 : index
      %19 = vector.load %arg6[%c0_14, %c0_15] : memref<1x128xf32, #tpu.memory_space<vmem>>, vector<1x128xf32>
      tpu.vector_store %arg6[%c0_14, %c0_15], %18 {strides = array<i32>} : memref<1x128xf32, #tpu.memory_space<vmem>>, vector<1x128xf32>,
      %cst_16 = arith.constant 0.000000e+00 : f32
      %20 = vector.broadcast %cst_16 : f32 to vector<1x128xf32>
      %c0_17 = arith.constant 0 : index
      %c0_18 = arith.constant 0 : index
      %21 = vector.load %arg7[%c0_17, %c0_18] : memref<1x128xf32, #tpu.memory_space<vmem>>, vector<1x128xf32>
      tpu.vector_store %arg7[%c0_17, %c0_18], %20 {strides = array<i32>} : memref<1x128xf32, #tpu.memory_space<vmem>>, vector<1x128xf32>,
    } else {
    }
    %c0 = arith.constant 0 : index
    %c0_1 = arith.constant 0 : index
    %3 = vector.load %arg1[%c0, %c0_1] : memref<512x128xf32, #tpu.memory_space<vmem>>, vector<512x128xf32>
    %c0_2 = arith.constant 0 : index
    %c0_3 = arith.constant 0 : index
    %4 = vector.load %arg6[%c0_2, %c0_3] : memref<1x128xf32, #tpu.memory_space<vmem>>, vector<1x128xf32>
    %cst = arith.constant dense<0.000000e+00> : vector<128xf32>
    %5 = vector.multi_reduction <add>, %3, %cst [0] : vector<512x128xf32> to vector<128xf32>
    %6 = vector.shape_cast %5 : vector<128xf32> to vector<1x128xf32>
    %7 = arith.addf %4, %6 : vector<1x128xf32>
    %c0_4 = arith.constant 0 : index
    %c0_5 = arith.constant 0 : index
    %8 = vector.load %arg6[%c0_4, %c0_5] : memref<1x128xf32, #tpu.memory_space<vmem>>, vector<1x128xf32>
    tpu.vector_store %arg6[%c0_4, %c0_5], %7 {strides = array<i32>} : memref<1x128xf32, #tpu.memory_space<vmem>>, vector<1x128xf32>,
    %c0_6 = arith.constant 0 : index
    %c0_7 = arith.constant 0 : index
    %9 = vector.load %arg7[%c0_6, %c0_7] : memref<1x128xf32, #tpu.memory_space<vmem>>, vector<1x128xf32>
    %10 = arith.mulf %3, %3 : vector<512x128xf32>
    %cst_8 = arith.constant dense<0.000000e+00> : vector<128xf32>
    %11 = vector.multi_reduction <add>, %10, %cst_8 [0] : vector<512x128xf32> to vector<128xf32>
    %12 = vector.shape_cast %11 : vector<128xf32> to vector<1x128xf32>
    %13 = arith.addf %9, %12 : vector<1x128xf32>
    %c0_9 = arith.constant 0 : index
    %c0_10 = arith.constant 0 : index
    %14 = vector.load %arg7[%c0_9, %c0_10] : memref<1x128xf32, #tpu.memory_space<vmem>>, vector<1x128xf32>
    tpu.vector_store %arg7[%c0_9, %c0_10], %13 {strides = array<i32>} : memref<1x128xf32, #tpu.memory_space<vmem>>, vector<1x128xf32>,
    %c0_i32_11 = arith.constant 0 : i32
    %15 = arith.cmpi eq, %arg0, %c0_i32_11 : i32
    %16 = arith.extui %15 : i1 to i32
    %c0_i32_12 = arith.constant 0 : i32
    %17 = arith.cmpi ne, %16, %c0_i32_12 : i32
    scf.if %17 {
      %c0_13 = arith.constant 0 : index
      %c0_14 = arith.constant 0 : index
      %18 = vector.load %arg6[%c0_13, %c0_14] : memref<1x128xf32, #tpu.memory_space<vmem>>, vector<1x128xf32>
      %cst_15 = arith.constant 0.001953125 : f32
      %19 = vector.broadcast %cst_15 : f32 to vector<1x128xf32>
      %20 = arith.mulf %18, %19 : vector<1x128xf32>
      %c0_16 = arith.constant 0 : index
      %c0_17 = arith.constant 0 : index
      %21 = vector.load %arg7[%c0_16, %c0_17] : memref<1x128xf32, #tpu.memory_space<vmem>>, vector<1x128xf32>
      %cst_18 = arith.constant 0.001953125 : f32
      %22 = vector.broadcast %cst_18 : f32 to vector<1x128xf32>
      %23 = arith.mulf %21, %22 : vector<1x128xf32>
      %24 = arith.mulf %20, %20 : vector<1x128xf32>
      %25 = arith.subf %23, %24 : vector<1x128xf32>
      %c0_19 = arith.constant 0 : index
      %c0_20 = arith.constant 0 : index
      %26 = vector.load %arg2[%c0_19, %c0_20] : memref<1x128xf32, #tpu.memory_space<vmem>>, vector<1x128xf32>
      %cst_21 = arith.constant 9.99999974E-6 : f32
      %27 = vector.broadcast %cst_21 : f32 to vector<1x128xf32>
      %28 = arith.addf %25, %27 : vector<1x128xf32>
      %29 = math.rsqrt %28 : vector<1x128xf32>
      %30 = arith.mulf %26, %29 : vector<1x128xf32>
      %c0_22 = arith.constant 0 : index
      %c0_23 = arith.constant 0 : index
      %31 = vector.load %arg4[%c0_22, %c0_23] : memref<1x128xf32, #tpu.memory_space<vmem>>, vector<1x128xf32>
      tpu.vector_store %arg4[%c0_22, %c0_23], %30 {strides = array<i32>} : memref<1x128xf32, #tpu.memory_space<vmem>>, vector<1x128xf32>,
      %c0_24 = arith.constant 0 : index
      %c0_25 = arith.constant 0 : index
      %32 = vector.load %arg3[%c0_24, %c0_25] : memref<1x128xf32, #tpu.memory_space<vmem>>, vector<1x128xf32>
      %33 = arith.mulf %20, %30 : vector<1x128xf32>
      %34 = arith.subf %32, %33 : vector<1x128xf32>
      %c0_26 = arith.constant 0 : index
      %c0_27 = arith.constant 0 : index
      %35 = vector.load %arg5[%c0_26, %c0_27] : memref<1x128xf32, #tpu.memory_space<vmem>>, vector<1x128xf32>
      tpu.vector_store %arg5[%c0_26, %c0_27], %34 {strides = array<i32>} : memref<1x128xf32, #tpu.memory_space<vmem>>, vector<1x128xf32>,
    } else {
    }
    return
  }
  func.func @transform_0(%arg0: i32) -> (i32, i32) {
    %c0_i32 = arith.constant 0 : i32
    %c0_i32_0 = arith.constant 0 : i32
    return %arg0, %c0_i32 : i32, i32
  }
  func.func @transform_1(%arg0: i32) -> (i32, i32) {
    %c0_i32 = arith.constant 0 : i32
    %c0_i32_0 = arith.constant 0 : i32
    %c0_i32_1 = arith.constant 0 : i32
    return %c0_i32, %c0_i32_0 : i32, i32
  }
  func.func @transform_2(%arg0: i32) -> (i32, i32) {
    %c0_i32 = arith.constant 0 : i32
    %c0_i32_0 = arith.constant 0 : i32
    %c0_i32_1 = arith.constant 0 : i32
    return %c0_i32, %c0_i32_0 : i32, i32
  }
  func.func @transform_3(%arg0: i32) -> (i32, i32) {
    %c0_i32 = arith.constant 0 : i32
    %c0_i32_0 = arith.constant 0 : i32
    %c0_i32_1 = arith.constant 0 : i32
    return %c0_i32, %c0_i32_0 : i32, i32
  }
  func.func @transform_4(%arg0: i32) -> (i32, i32) {
    %c0_i32 = arith.constant 0 : i32
    %c0_i32_0 = arith.constant 0 : i32
    %c0_i32_1 = arith.constant 0 : i32
    return %c0_i32, %c0_i32_0 : i32, i32
  }
}

</mosaic_0001>

<bundles_post_ra>
// kernel: tpu_custom_call.1
= control target key start
LH: loop header
LB: loop body
LE: loop exit
PB: predicated region body
PF: predicated region fallthrough
CT: control target
= control target key end

     0   :  { %10 = vsyncpa [#allocation5], 0  ;;  %s477_s0 = inlined_call_operand.hbm [shape: f32[512,128], index: 0, kind: input, shape index: {}]   ;;  %s478_s1 = inlined_call_operand.vmem [shape: f32[1,128], index: 1, kind: input, shape index: {}]   ;;  %s479_s2 = inlined_call_operand.vmem [shape: f32[1,128], index: 2, kind: input, shape index: {}]   ;;  %s480_s3 = inlined_call_operand.hbm [shape: f32[1,128], index: 3, kind: output, shape index: {0}]   ;;  %s481_s4 = inlined_call_operand.hbm [shape: f32[1,128], index: 4, kind: output, shape index: {1}]  }
   0x1   :  { %11 = vsyncpa [#allocation6], 0 }
   0x2   :  { %12 = vsyncpa [#allocation9], 0  ;;  %s431_s15 = smov [#allocation4]  }
   0x3   :  { %s18_s16 = sshll.u32 %s431_s15, 4  ;;  %s19_s16 = int_to_ptr.vmem [resolvable:$true] %s18_s16 }
   0x4   :  { %s373_s17 = scalar_lea.vmem %s19_s16, 8192  ;;  %p378_p1 = scmp.lt.s32.totalorder %s19_s16, %s19_s16 }
   0x5   :  { %p374_p0 = scmp.ne.s32.totalorder %s19_s16, %s373_s17  ;;  %p379_p2 = scmp.lt.s32.totalorder %s373_s17, %s373_s17 }
   0x7   :  { %p380_p3 = por %p379_p2, %p378_p1 }
   0x9   :  { %p381_p4 = pnand %p380_p3, %p374_p0 }
   0xb   :  { %384 = shalt.err (!%p381_p4)
}
   0xc   :  { %s432_s18 = smov 128   ;;  %s433_s19 = smov 8  }
   0xd   :  { %24 = dma.hbm_to_vmem [thread:$0]  %s477_s0, 8192, %s19_s16, [#allocation5], %s432_s18, %s432_s18, %s433_s19  }
   0xe   :  { %425 = dma.done.wait [#allocation5], 8192  }
   0xf   :  { %426 = vsyncadd [#allocation5], 4294959104  ;;  %v434_v0 = vmov 0.0   ;;  %v38_v1 = vld [vmem:[#allocation4] sm:$0xff]  ;;  %v39_v2 = vld [vmem:[#allocation4 + $0x8] sm:$0xff]  ;;  %s435_s23 = smov [#allocation7]  }
  0x10   :  { %36 = vst [vmem:[#allocation2] sm:$0x1] %v434_v0  ;;  %37 = vst [vmem:[#allocation3] sm:$0x1] %v434_v0  ;;  %v40_v3 = vld [vmem:[#allocation4 + $0x10] sm:$0xff]  ;;  %v41_v4 = vld [vmem:[#allocation4 + $0x18] sm:$0xff]  ;;  %v103_v5 = vadd.f32 %v39_v2, %v38_v1  ;;  %v175_v6 = vmul.f32 %v38_v1, %v38_v1  ;;  %v176_v7 = vmul.f32 %v39_v2, %v39_v2 }
  0x11   :  { %v177_v8 = vmul.f32 %v40_v3, %v40_v3  ;;  %v42_v9 = vld [vmem:[#allocation4 + $0x20] sm:$0xff]  ;;  %v178_v11 = vmul.f32 %v41_v4, %v41_v4  ;;  %v43_v13 = vld [vmem:[#allocation4 + $0x28] sm:$0xff]  ;;  %v44_v17 = vld [vmem:[#allocation4 + $0x30] sm:$0xff]  ;;  %s334_s24 = sshll.u32 %s435_s23, 4  ;;  %s436_s27 = smov [#allocation8]   ;;  %s335_s24 = int_to_ptr.vmem [resolvable:$true] %s334_s24 }
  0x12   :  { %v104_v10 = vadd.f32 %v103_v5, %v40_v3  ;;  %v239_v12 = vadd.f32 %v176_v7, %v175_v6  ;;  %v179_v15 = vmul.f32 %v42_v9, %v42_v9  ;;  %v180_v19 = vmul.f32 %v43_v13, %v43_v13  ;;  %v45_v21 = vld [vmem:[#allocation4 + $0x38] sm:$0xff]  ;;  %v46_v25 = vld [vmem:[#allocation4 + $0x40] sm:$0xff]  ;;  %v47_v29 = vld [vmem:[#allocation4 + $0x48] sm:$0xff]  ;;  %s344_s28 = sshll.u32 %s436_s27, 4  ;;  %s385_s29 = scalar_lea.vmem %s335_s24, 16  ;;  %s345_s28 = int_to_ptr.vmem [resolvable:$true] %s344_s28 }
  0x13   :  { %v181_v23 = vmul.f32 %v44_v17, %v44_v17  ;;  %v182_v27 = vmul.f32 %v45_v21, %v45_v21  ;;  %v183_v31 = vmul.f32 %v46_v25, %v46_v25  ;;  %v48_v33 = vld [vmem:[#allocation4 + $0x50] sm:$0xff]  ;;  %v184_v35 = vmul.f32 %v47_v29, %v47_v29  ;;  %v49_v37 = vld [vmem:[#allocation4 + $0x58] sm:$0xff]  ;;  %v50_v41 = vld [vmem:[#allocation4 + $0x60] sm:$0xff]  ;;  %p386_p5 = scmp.ne.s32.totalorder %s335_s24, %s385_s29  ;;  %s389_s30 = scalar_lea.vmem %s335_s24, 32 }
  0x14   :  { %v105_v14 = vadd.f32 %v104_v10, %v41_v4  ;;  %v240_v16 = vadd.f32 %v239_v12, %v177_v8  ;;  %v185_v39 = vmul.f32 %v48_v33, %v48_v33  ;;  %v186_v43 = vmul.f32 %v49_v37, %v49_v37  ;;  %v51_v45 = vld [vmem:[#allocation4 + $0x68] sm:$0xff]  ;;  %v52_v49 = vld [vmem:[#allocation4 + $0x70] sm:$0xff]  ;;  %v53_v53 = vld [vmem:[#allocation4 + $0x78] sm:$0xff]  ;;  %p390_p6 = scmp.lt.s32.totalorder %s335_s24, %s335_s24  ;;  %p391_p7 = scmp.lt.s32.totalorder %s389_s30, %s385_s29 }
  0x15   :  { %v187_v47 = vmul.f32 %v50_v41, %v50_v41  ;;  %v188_v51 = vmul.f32 %v51_v45, %v51_v45  ;;  %v189_v55 = vmul.f32 %v52_v49, %v52_v49  ;;  %v54_v57 = vld [vmem:[#allocation4 + $0x80] sm:$0xff]  ;;  %v190_v59 = vmul.f32 %v53_v53, %v53_v53  ;;  %v55_v61 = vld [vmem:[#allocation4 + $0x88] sm:$0xff]  ;;  %v56_v1 = vld [vmem:[#allocation4 + $0x90] sm:$0xff] }
  0x16   :  { %v106_v18 = vadd.f32 %v105_v14, %v42_v9  ;;  %v241_v20 = vadd.f32 %v240_v16, %v178_v11  ;;  %v191_v63 = vmul.f32 %v54_v57, %v54_v57  ;;  %v192_v3 = vmul.f32 %v55_v61, %v55_v61  ;;  %v57_v5 = vld [vmem:[#allocation4 + $0x98] sm:$0xff]  ;;  %v58_v9 = vld [vmem:[#allocation4 + $0xa0] sm:$0xff]  ;;  %p392_p8 = por %p391_p7, %p390_p6 }
  0x17   :  { %v193_v7 = vmul.f32 %v56_v1, %v56_v1  ;;  %v194_v11 = vmul.f32 %v57_v5, %v57_v5 }
  0x18   :  { %v107_v22 = vadd.f32 %v106_v18, %v43_v13  ;;  %v242_v24 = vadd.f32 %v241_v20, %v179_v15  ;;  %v59_v13 = vld [vmem:[#allocation4 + $0xa8] sm:$0xff]  ;;  %v195_v15 = vmul.f32 %v58_v9, %v58_v9  ;;  %p393_p9 = pnand %p392_p8, %p386_p5 }
  0x1a   :  { %v108_v26 = vadd.f32 %v107_v22, %v44_v17  ;;  %v243_v28 = vadd.f32 %v242_v24, %v180_v19  ;;  %v60_v17 = vld [vmem:[#allocation4 + $0xb0] sm:$0xff]  ;;  %v196_v19 = vmul.f32 %v59_v13, %v59_v13 }
  0x1c   :  { %v109_v30 = vadd.f32 %v108_v26, %v45_v21  ;;  %v244_v32 = vadd.f32 %v243_v28, %v181_v23  ;;  %v61_v21 = vld [vmem:[#allocation4 + $0xb8] sm:$0xff]  ;;  %v197_v23 = vmul.f32 %v60_v17, %v60_v17 }
  0x1e   :  { %v110_v34 = vadd.f32 %v109_v30, %v46_v25  ;;  %v245_v36 = vadd.f32 %v244_v32, %v182_v27  ;;  %v62_v25 = vld [vmem:[#allocation4 + $0xc0] sm:$0xff]  ;;  %v198_v27 = vmul.f32 %v61_v21, %v61_v21 }
  0x20   :  { %v111_v38 = vadd.f32 %v110_v34, %v47_v29  ;;  %v246_v40 = vadd.f32 %v245_v36, %v183_v31  ;;  %v63_v29 = vld [vmem:[#allocation4 + $0xc8] sm:$0xff]  ;;  %v199_v31 = vmul.f32 %v62_v25, %v62_v25 }
  0x22   :  { %v112_v42 = vadd.f32 %v111_v38, %v48_v33  ;;  %v247_v44 = vadd.f32 %v246_v40, %v184_v35  ;;  %v64_v33 = vld [vmem:[#allocation4 + $0xd0] sm:$0xff]  ;;  %v200_v35 = vmul.f32 %v63_v29, %v63_v29 }
  0x24   :  { %v113_v46 = vadd.f32 %v112_v42, %v49_v37  ;;  %v248_v48 = vadd.f32 %v247_v44, %v185_v39  ;;  %v65_v37 = vld [vmem:[#allocation4 + $0xd8] sm:$0xff]  ;;  %v201_v39 = vmul.f32 %v64_v33, %v64_v33 }
  0x26   :  { %v114_v50 = vadd.f32 %v113_v46, %v50_v41  ;;  %v249_v52 = vadd.f32 %v248_v48, %v186_v43  ;;  %v66_v41 = vld [vmem:[#allocation4 + $0xe0] sm:$0xff]  ;;  %v202_v43 = vmul.f32 %v65_v37, %v65_v37 }
  0x28   :  { %v115_v54 = vadd.f32 %v114_v50, %v51_v45  ;;  %v250_v56 = vadd.f32 %v249_v52, %v187_v47  ;;  %v67_v45 = vld [vmem:[#allocation4 + $0xe8] sm:$0xff]  ;;  %v203_v47 = vmul.f32 %v66_v41, %v66_v41 }
  0x2a   :  { %v116_v58 = vadd.f32 %v115_v54, %v52_v49  ;;  %v251_v60 = vadd.f32 %v250_v56, %v188_v51  ;;  %v68_v49 = vld [vmem:[#allocation4 + $0xf0] sm:$0xff]  ;;  %v204_v51 = vmul.f32 %v67_v45, %v67_v45 }
  0x2c   :  { %v117_v62 = vadd.f32 %v116_v58, %v53_v53  ;;  %v252_v0 = vadd.f32 %v251_v60, %v189_v55  ;;  %v69_v53 = vld [vmem:[#allocation4 + $0xf8] sm:$0xff]  ;;  %v205_v55 = vmul.f32 %v68_v49, %v68_v49 }
  0x2e   :  { %v118_v2 = vadd.f32 %v117_v62, %v54_v57  ;;  %v253_v4 = vadd.f32 %v252_v0, %v190_v59  ;;  %v70_v57 = vld [vmem:[#allocation4 + $0x100] sm:$0xff]  ;;  %v206_v59 = vmul.f32 %v69_v53, %v69_v53 }
  0x30   :  { %v119_v6 = vadd.f32 %v118_v2, %v55_v61  ;;  %v254_v8 = vadd.f32 %v253_v4, %v191_v63  ;;  %v71_v61 = vld [vmem:[#allocation4 + $0x108] sm:$0xff]  ;;  %v207_v63 = vmul.f32 %v70_v57, %v70_v57 }
  0x32   :  { %v120_v10 = vadd.f32 %v119_v6, %v56_v1  ;;  %v255_v12 = vadd.f32 %v254_v8, %v192_v3  ;;  %v72_v1 = vld [vmem:[#allocation4 + $0x110] sm:$0xff]  ;;  %v208_v3 = vmul.f32 %v71_v61, %v71_v61 }
  0x34   :  { %v121_v14 = vadd.f32 %v120_v10, %v57_v5  ;;  %v256_v16 = vadd.f32 %v255_v12, %v193_v7  ;;  %v73_v5 = vld [vmem:[#allocation4 + $0x118] sm:$0xff]  ;;  %v209_v7 = vmul.f32 %v72_v1, %v72_v1 }
  0x36   :  { %v122_v18 = vadd.f32 %v121_v14, %v58_v9  ;;  %v257_v20 = vadd.f32 %v256_v16, %v194_v11  ;;  %v74_v9 = vld [vmem:[#allocation4 + $0x120] sm:$0xff]  ;;  %v210_v11 = vmul.f32 %v73_v5, %v73_v5 }
  0x38   :  { %v123_v22 = vadd.f32 %v122_v18, %v59_v13  ;;  %v258_v24 = vadd.f32 %v257_v20, %v195_v15  ;;  %v75_v13 = vld [vmem:[#allocation4 + $0x128] sm:$0xff]  ;;  %v211_v15 = vmul.f32 %v74_v9, %v74_v9 }
  0x3a   :  { %v124_v26 = vadd.f32 %v123_v22, %v60_v17  ;;  %v259_v28 = vadd.f32 %v258_v24, %v196_v19  ;;  %v76_v17 = vld [vmem:[#allocation4 + $0x130] sm:$0xff]  ;;  %v212_v19 = vmul.f32 %v75_v13, %v75_v13 }
  0x3c   :  { %v125_v30 = vadd.f32 %v124_v26, %v61_v21  ;;  %v260_v32 = vadd.f32 %v259_v28, %v197_v23  ;;  %v77_v21 = vld [vmem:[#allocation4 + $0x138] sm:$0xff]  ;;  %v213_v23 = vmul.f32 %v76_v17, %v76_v17 }
  0x3e   :  { %v126_v34 = vadd.f32 %v125_v30, %v62_v25  ;;  %v261_v36 = vadd.f32 %v260_v32, %v198_v27  ;;  %v78_v25 = vld [vmem:[#allocation4 + $0x140] sm:$0xff]  ;;  %v214_v27 = vmul.f32 %v77_v21, %v77_v21 }
  0x40   :  { %v127_v38 = vadd.f32 %v126_v34, %v63_v29  ;;  %v262_v40 = vadd.f32 %v261_v36, %v199_v31  ;;  %v79_v29 = vld [vmem:[#allocation4 + $0x148] sm:$0xff]  ;;  %v215_v31 = vmul.f32 %v78_v25, %v78_v25 }
  0x42   :  { %v128_v42 = vadd.f32 %v127_v38, %v64_v33  ;;  %v263_v44 = vadd.f32 %v262_v40, %v200_v35  ;;  %v80_v33 = vld [vmem:[#allocation4 + $0x150] sm:$0xff]  ;;  %v216_v35 = vmul.f32 %v79_v29, %v79_v29 }
  0x44   :  { %v129_v46 = vadd.f32 %v128_v42, %v65_v37  ;;  %v264_v48 = vadd.f32 %v263_v44, %v201_v39  ;;  %v81_v37 = vld [vmem:[#allocation4 + $0x158] sm:$0xff]  ;;  %v217_v39 = vmul.f32 %v80_v33, %v80_v33 }
  0x46   :  { %v130_v50 = vadd.f32 %v129_v46, %v66_v41  ;;  %v265_v52 = vadd.f32 %v264_v48, %v202_v43  ;;  %v82_v41 = vld [vmem:[#allocation4 + $0x160] sm:$0xff]  ;;  %v218_v43 = vmul.f32 %v81_v37, %v81_v37 }
  0x48   :  { %v131_v54 = vadd.f32 %v130_v50, %v67_v45  ;;  %v266_v56 = vadd.f32 %v265_v52, %v203_v47  ;;  %v83_v45 = vld [vmem:[#allocation4 + $0x168] sm:$0xff]  ;;  %v219_v47 = vmul.f32 %v82_v41, %v82_v41 }
  0x4a   :  { %v132_v58 = vadd.f32 %v131_v54, %v68_v49  ;;  %v267_v60 = vadd.f32 %v266_v56, %v204_v51  ;;  %v84_v49 = vld [vmem:[#allocation4 + $0x170] sm:$0xff]  ;;  %v220_v51 = vmul.f32 %v83_v45, %v83_v45 }
  0x4c   :  { %v133_v62 = vadd.f32 %v132_v58, %v69_v53  ;;  %v268_v0 = vadd.f32 %v267_v60, %v205_v55  ;;  %v85_v53 = vld [vmem:[#allocation4 + $0x178] sm:$0xff]  ;;  %v221_v55 = vmul.f32 %v84_v49, %v84_v49 }
  0x4e   :  { %v134_v2 = vadd.f32 %v133_v62, %v70_v57  ;;  %v269_v4 = vadd.f32 %v268_v0, %v206_v59  ;;  %v86_v57 = vld [vmem:[#allocation4 + $0x180] sm:$0xff]  ;;  %v222_v59 = vmul.f32 %v85_v53, %v85_v53 }
  0x50   :  { %v135_v6 = vadd.f32 %v134_v2, %v71_v61  ;;  %v270_v8 = vadd.f32 %v269_v4, %v207_v63  ;;  %v87_v61 = vld [vmem:[#allocation4 + $0x188] sm:$0xff]  ;;  %v223_v63 = vmul.f32 %v86_v57, %v86_v57 }
  0x52   :  { %v136_v10 = vadd.f32 %v135_v6, %v72_v1  ;;  %v271_v12 = vadd.f32 %v270_v8, %v208_v3  ;;  %v88_v1 = vld [vmem:[#allocation4 + $0x190] sm:$0xff]  ;;  %v224_v3 = vmul.f32 %v87_v61, %v87_v61 }
  0x54   :  { %v137_v14 = vadd.f32 %v136_v10, %v73_v5  ;;  %v272_v16 = vadd.f32 %v271_v12, %v209_v7  ;;  %v89_v5 = vld [vmem:[#allocation4 + $0x198] sm:$0xff]  ;;  %v225_v7 = vmul.f32 %v88_v1, %v88_v1 }
  0x56   :  { %v138_v18 = vadd.f32 %v137_v14, %v74_v9  ;;  %v273_v20 = vadd.f32 %v272_v16, %v210_v11  ;;  %v90_v9 = vld [vmem:[#allocation4 + $0x1a0] sm:$0xff]  ;;  %v226_v11 = vmul.f32 %v89_v5, %v89_v5 }
  0x58   :  { %v139_v22 = vadd.f32 %v138_v18, %v75_v13  ;;  %v274_v24 = vadd.f32 %v273_v20, %v211_v15  ;;  %v91_v13 = vld [vmem:[#allocation4 + $0x1a8] sm:$0xff]  ;;  %v227_v15 = vmul.f32 %v90_v9, %v90_v9 }
  0x5a   :  { %v140_v26 = vadd.f32 %v139_v22, %v76_v17  ;;  %v275_v28 = vadd.f32 %v274_v24, %v212_v19  ;;  %v92_v17 = vld [vmem:[#allocation4 + $0x1b0] sm:$0xff]  ;;  %v228_v19 = vmul.f32 %v91_v13, %v91_v13 }
  0x5c   :  { %v141_v30 = vadd.f32 %v140_v26, %v77_v21  ;;  %v276_v32 = vadd.f32 %v275_v28, %v213_v23  ;;  %v93_v21 = vld [vmem:[#allocation4 + $0x1b8] sm:$0xff]  ;;  %v229_v23 = vmul.f32 %v92_v17, %v92_v17 }
  0x5e   :  { %v142_v34 = vadd.f32 %v141_v30, %v78_v25  ;;  %v277_v36 = vadd.f32 %v276_v32, %v214_v27  ;;  %v94_v25 = vld [vmem:[#allocation4 + $0x1c0] sm:$0xff]  ;;  %v230_v27 = vmul.f32 %v93_v21, %v93_v21 }
  0x60   :  { %v143_v38 = vadd.f32 %v142_v34, %v79_v29  ;;  %v278_v40 = vadd.f32 %v277_v36, %v215_v31  ;;  %v95_v29 = vld [vmem:[#allocation4 + $0x1c8] sm:$0xff]  ;;  %v231_v31 = vmul.f32 %v94_v25, %v94_v25 }
  0x62   :  { %v144_v42 = vadd.f32 %v143_v38, %v80_v33  ;;  %v279_v44 = vadd.f32 %v278_v40, %v216_v35  ;;  %v96_v33 = vld [vmem:[#allocation4 + $0x1d0] sm:$0xff]  ;;  %v232_v35 = vmul.f32 %v95_v29, %v95_v29 }
  0x64   :  { %v145_v46 = vadd.f32 %v144_v42, %v81_v37  ;;  %v280_v48 = vadd.f32 %v279_v44, %v217_v39  ;;  %v97_v37 = vld [vmem:[#allocation4 + $0x1d8] sm:$0xff]  ;;  %v233_v39 = vmul.f32 %v96_v33, %v96_v33 }
  0x66   :  { %v146_v50 = vadd.f32 %v145_v46, %v82_v41  ;;  %v281_v52 = vadd.f32 %v280_v48, %v218_v43  ;;  %v98_v41 = vld [vmem:[#allocation4 + $0x1e0] sm:$0xff]  ;;  %v234_v43 = vmul.f32 %v97_v37, %v97_v37 }
  0x68   :  { %v147_v54 = vadd.f32 %v146_v50, %v83_v45  ;;  %v282_v56 = vadd.f32 %v281_v52, %v219_v47  ;;  %v99_v45 = vld [vmem:[#allocation4 + $0x1e8] sm:$0xff]  ;;  %v235_v47 = vmul.f32 %v98_v41, %v98_v41 }
  0x6a   :  { %v148_v58 = vadd.f32 %v147_v54, %v84_v49  ;;  %v283_v60 = vadd.f32 %v282_v56, %v220_v51  ;;  %v100_v49 = vld [vmem:[#allocation4 + $0x1f0] sm:$0xff]  ;;  %v236_v51 = vmul.f32 %v99_v45, %v99_v45 }
  0x6c   :  { %v149_v62 = vadd.f32 %v148_v58, %v85_v53  ;;  %v284_v0 = vadd.f32 %v283_v60, %v221_v55  ;;  %v101_v53 = vld [vmem:[#allocation4 + $0x1f8] sm:$0xff]  ;;  %v237_v55 = vmul.f32 %v100_v49, %v100_v49 }
  0x6d   :  { %v238_v58 = vmul.f32 %v101_v53, %v101_v53 }
  0x6e   :  { %v150_v2 = vadd.f32 %v149_v62, %v86_v57  ;;  %v285_v4 = vadd.f32 %v284_v0, %v222_v59 }
  0x70   :  { %v151_v6 = vadd.f32 %v150_v2, %v87_v61  ;;  %v286_v8 = vadd.f32 %v285_v4, %v223_v63 }
  0x72   :  { %v152_v10 = vadd.f32 %v151_v6, %v88_v1  ;;  %v287_v12 = vadd.f32 %v286_v8, %v224_v3 }
  0x74   :  { %v153_v14 = vadd.f32 %v152_v10, %v89_v5  ;;  %v288_v16 = vadd.f32 %v287_v12, %v225_v7  ;;  %v102_v7 = vld [vmem:[#allocation2] sm:$0x1]  ;;  %v174_v12 = vld [vmem:[#allocation3] sm:$0x1] }
  0x76   :  { %v154_v18 = vadd.f32 %v153_v14, %v90_v9  ;;  %v289_v20 = vadd.f32 %v288_v16, %v226_v11 }
  0x78   :  { %v155_v22 = vadd.f32 %v154_v18, %v91_v13  ;;  %v290_v24 = vadd.f32 %v289_v20, %v227_v15 }
  0x7a   :  { %v156_v26 = vadd.f32 %v155_v22, %v92_v17  ;;  %v291_v28 = vadd.f32 %v290_v24, %v228_v19  ;;  %v319_v22 = vld [vmem:[%s478_s1] sm:$0x1] }
  0x7c   :  { %v157_v30 = vadd.f32 %v156_v26, %v93_v21  ;;  %v292_v32 = vadd.f32 %v291_v28, %v229_v23 }
  0x7e   :  { %v158_v34 = vadd.f32 %v157_v30, %v94_v25  ;;  %v293_v36 = vadd.f32 %v292_v32, %v230_v27  ;;  %v324_v25 = vld [vmem:[%s479_s2] sm:$0x1] }
  0x80   :  { %v159_v38 = vadd.f32 %v158_v34, %v95_v29  ;;  %v294_v40 = vadd.f32 %v293_v36, %v231_v31 }
  0x82   :  { %v160_v42 = vadd.f32 %v159_v38, %v96_v33  ;;  %v295_v44 = vadd.f32 %v294_v40, %v232_v35 }
  0x84   :  { %v161_v46 = vadd.f32 %v160_v42, %v97_v37  ;;  %v296_v48 = vadd.f32 %v295_v44, %v233_v39 }
  0x86   :  { %v162_v50 = vadd.f32 %v161_v46, %v98_v41  ;;  %v297_v52 = vadd.f32 %v296_v48, %v234_v43 }
  0x88   :  { %v163_v54 = vadd.f32 %v162_v50, %v99_v45  ;;  %v298_v56 = vadd.f32 %v297_v52, %v235_v47 }
  0x8a   :  { %v164_v57 = vadd.f32 %v163_v54, %v100_v49  ;;  %v299_v59 = vadd.f32 %v298_v56, %v236_v51 }
  0x8c   :  { %v165_v60 = vadd.f32 %v164_v57, %v101_v53  ;;  %v300_v61 = vadd.f32 %v299_v59, %v237_v55 }
  0x8e   :  { %v166_v62 = vrot.slane %v165_v60, 4  ;;  %v301_v63 = vadd.f32 %v300_v61, %v238_v58 }
  0x90   :  { %v167_v0 = vadd.f32 %v166_v62, %v165_v60  ;;  %v302_v1 = vrot.slane %v301_v63, 4 }
  0x92   :  { %v168_v2 = vrot.slane %v167_v0, 2  ;;  %v303_v3 = vadd.f32 %v302_v1, %v301_v63 }
  0x94   :  { %v169_v4 = vadd.f32 %v168_v2, %v167_v0  ;;  %v304_v5 = vrot.slane %v303_v3, 2 }
  0x96   :  { %v170_v6 = vrot.slane %v169_v4, 1  ;;  %v305_v8 = vadd.f32 %v304_v5, %v303_v3 }
  0x98   :  { %v171_v9 = vadd.f32 %v170_v6, %v169_v4  ;;  %v306_v10 = vrot.slane %v305_v8, 1 }
  0x9a   :  { %v172_v11 = vadd.f32 %v171_v9, %v102_v7  ;;  %v307_v13 = vadd.f32 %v306_v10, %v305_v8 }
  0x9c   :  { %173 = vst [vmem:[#allocation2] sm:$0x1] %v172_v11  ;;  %v308_v14 = vadd.f32 %v307_v13, %v174_v12 }
  0x9e   :  { %309 = vst [vmem:[#allocation3] sm:$0x1] %v308_v14 }
  0xa3   :  { %v313_v15 = vld [vmem:[#allocation2] sm:$0x1] }
  0xa4   :  { %v314_v16 = vmul.f32 0.001953125, %v313_v15 }
  0xa5   :  { %v315_v17 = vld [vmem:[#allocation3] sm:$0x1] }
  0xa6   :  { %v317_v18 = vmul.f32 %v314_v16, %v314_v16  ;;  %v316_v19 = vmul.f32 0.001953125, %v315_v17 }
  0xa8   :  { %v318_v20 = vsub.f32 %v316_v19, %v317_v18 }
  0xaa   :  { %v320_v21 = vadd.f32 1e-05, %v318_v20 }
  0xac   :  { %363 = vrsqrt.f32 %v320_v21 }
  0xb9   :  { %v364_v23 = vpop.eup %363 }
  0xba   :  { %v322_v24 = vmul.f32 %v364_v23, %v319_v22 }
  0xbc   :  { %323 = vst [vmem:[#allocation7] sm:$0x1] %v322_v24  ;;  %v325_v26 = vmul.f32 %v322_v24, %v314_v16 }
  0xbd   :  { %396 = shalt.err (!%p393_p9)
}
  0xbe   :  { %337 = dma.vmem_to_hbm [thread:$0]  %s335_s24, 16, %s480_s3, [#allocation6]   ;;  %v326_v27 = vsub.f32 %v324_v25, %v325_v26 }
  0xbf   :  { %s405_s2 = scalar_lea.vmem %s345_s28, 16  ;;  %s409_s6 = scalar_lea.vmem %s345_s28, 32 }
  0xc0   :  { %327 = vst [vmem:[#allocation8] sm:$0x1] %v326_v27  ;;  %p406_p10 = scmp.ne.s32.totalorder %s345_s28, %s405_s2  ;;  %p410_p11 = scmp.lt.s32.totalorder %s345_s28, %s345_s28 }
  0xc1   :  { %p411_p12 = scmp.lt.s32.totalorder %s409_s6, %s405_s2 }
  0xc3   :  { %p412_p13 = por %p411_p12, %p410_p11 }
  0xc5   :  { %p413_p0 = pnand %p412_p13, %p406_p10 }
  0xc7   :  { %416 = shalt.err (!%p413_p0)
}
  0xc8   :  { %347 = dma.vmem_to_hbm [thread:$0]  %s345_s28, 16, %s481_s4, [#allocation9]  }
  0xc9   :  { %427 = dma.done.wait [#allocation6], 16  }
  0xca   :  { %428 = vsyncadd [#allocation6], 4294967280 }
  0xcb   :  { %429 = dma.done.wait [#allocation9], 16  }
  0xcc   :  { %430 = vsyncadd [#allocation9], 4294967280 }
  0xcd   :  { %354 = vsyncpa [#allocation5], 1 }
  0xce   :  { %355 = vsyncpa [#allocation6], 1 }
  0xcf   :  { %356 = vsyncpa [#allocation9], 1 }

</bundles_post_ra>
